<compile_context>
chip_gen: v7x
topology: tpu7x:2x2x1
jax: 0.10.0
libtpu: 0.0.40
codegen_flags: <defaults>
</compile_context>

<pallas_src>
import functools

import jax
import jax.numpy as jnp
from jax.experimental import pallas as pl
from jax.experimental.pallas import tpu as pltpu


def _gauss_conv_kernel(x_ref, g_ref, o_ref, xpad_ref, *, ksize, pad, halo, out_len):
    # x_ref:    (TB, L)              VMEM input tile (auto-pipelined)
    # g_ref:    (ksize,)             SMEM normalized gaussian taps
    # o_ref:    (TB, out_len)        VMEM output tile
    # xpad_ref: (TB, halo+L+pad)     VMEM scratch: zero-padded copy of the tile
    tb, L = x_ref.shape

    # Build the zero-padded tile in VMEM (replaces a wrapper-side jnp.pad).
    # Strips are rewritten every step (two tiny masked stores) so correctness
    # does not depend on seeing grid step 0 when the axis is core-sharded.
    if pad > 0:
        zeros_strip = jnp.zeros((tb, pad), xpad_ref.dtype)
        xpad_ref[:, halo - pad:halo] = zeros_strip
        xpad_ref[:, halo + L:halo + L + pad] = zeros_strip
    xpad_ref[:, halo:halo + L] = x_ref[...]          # lane-aligned bulk store

    # Tap loop (static unroll): shift-multiply-accumulate in f32.
    gs = [g_ref[k] for k in range(ksize)]            # hoist SMEM scalar reads
    base = halo - pad
    acc = xpad_ref[:, base:base + out_len].astype(jnp.float32) * gs[0]
    for k in range(1, ksize):
        tap = xpad_ref[:, base + k:base + k + out_len].astype(jnp.float32)
        acc = acc + tap * gs[k]
    o_ref[...] = acc.astype(o_ref.dtype)


def _pick_row_tile(B, L):
    """Largest row tile that divides B, is a multiple of 8, and keeps the f32
    input block around ~2 MiB (knee of the measured HBM-roofline curve) so
    double-buffered in+out blocks plus the scratch stay well inside every
    generation's VMEM budget (incl. v7x's 64 MiB physical)."""
    if B <= 8 or B % 8 != 0:
        return B                                   # tiny/ragged batch: full rows
    target = max(8, ((2 * 1024 * 1024) // 4) // max(L, 1))
    tb = min(B, max(8, (target // 8) * 8))
    while B % tb != 0:
        tb -= 8
    return tb


def gaussian_conv(x, alpha, beta, node_features, *, row_tile=None):
    """Equivalent of GaussianConv.forward for 2-D x of shape (B, L)."""
    B, L = x.shape
    ksize = int(node_features)
    pad = (ksize - 1) // 2
    out_len = L + 2 * pad - ksize + 1              # == L for odd ksize
    halo = ((pad + 127) // 128) * 128              # left pad rounded to 128 lanes

    # --- parameter glue (plain JAX, K scalars): normalized gaussian taps ---
    idx = jnp.arange(ksize, dtype=jnp.float32)
    g = jnp.exp(-(idx - alpha) ** 2 / (2.0 * beta ** 2))
    g = g / jnp.sum(g)

    tb = row_tile if row_tile is not None else _pick_row_tile(B, L)
    assert B % tb == 0, "row_tile must divide the batch dimension"
    grid = (B // tb,)

    # TODO(synk): for very long L, tile the conv axis too (needs a halo'd
    # input window via manual DMA); rows-only tiling keeps blocks lane-dense
    # and is sufficient for the sequence lengths this module sees.
    kernel = functools.partial(_gauss_conv_kernel, ksize=ksize, pad=pad,
                               halo=halo, out_len=out_len)
    return pl.pallas_call(
        kernel,
        out_shape=jax.ShapeDtypeStruct((B, out_len), x.dtype),
        grid_spec=pltpu.PrefetchScalarGridSpec(
            num_scalar_prefetch=0,
            grid=grid,
            in_specs=[
                pl.BlockSpec((tb, L), lambda i: (i, 0)),            # x tile
                pl.BlockSpec(memory_space=pltpu.MemorySpace.SMEM),  # taps
            ],
            out_specs=pl.BlockSpec((tb, out_len), lambda i: (i, 0)),
            scratch_shapes=[pltpu.VMEM((tb, halo + L + pad), x.dtype)],
        ),
        compiler_params=pltpu.CompilerParams(
            dimension_semantics=("parallel",),   # shard batch tiles across TCs
            vmem_limit_bytes=32 * 1024 * 1024,
        ),
    )(x, g)


def _reference(x, alpha, beta, node_features):
    """Pure-JAX reference matching F.conv1d cross-correlation semantics."""
    ksize = int(node_features)
    pad = (ksize - 1) // 2
    idx = jnp.arange(ksize, dtype=jnp.float32)
    g = jnp.exp(-(idx - alpha) ** 2 / (2.0 * beta ** 2))
    g = g / jnp.sum(g)
    x_pad = jnp.pad(x, ((0, 0), (pad, pad)))
    out_len = x.shape[1] + 2 * pad - ksize + 1
    out = jnp.zeros((x.shape[0], out_len), jnp.float32)
    for k in range(ksize):
        out = out + x_pad[:, k:k + out_len] * g[k]
    return out.astype(x.dtype)


if __name__ == "__main__":
    # Module config (deterministic, in-script): node_features = kernel size.
    node_features = 9
    initial_alpha = jnp.float32((node_features - 1) / 2.0)   # kernel center
    initial_beta = jnp.float32(2.0)

    # Example input: 16 sequences of length 256 (lane-dense output blocks).
    key = jax.random.PRNGKey(0)
    x = jax.random.normal(key, (16, 256), dtype=jnp.float32)

    # row_tile=8 -> grid of 2 steps, exercising the tiled/pipelined path.
    out = gaussian_conv(x, initial_alpha, initial_beta, node_features, row_tile=8)
    out = jax.block_until_ready(out)

    ref = _reference(x, initial_alpha, initial_beta, node_features)
    assert out.shape == ref.shape
    assert jnp.allclose(out, ref, atol=1e-5, rtol=1e-5)

    print("KERNEL_OK")
</pallas_src>

<mosaic_0001>
module attributes {stable_mosaic.version = 11 : i64} {
  func.func @_gauss_conv_kernel(%arg0: i32, %arg1: memref<8x256xf32, #tpu.memory_space<vmem>>, %arg2: memref<9xf32, #tpu.memory_space<smem>>, %arg3: memref<8x256xf32, #tpu.memory_space<vmem>>, %arg4: memref<8x388xf32, #tpu.memory_space<vmem>>) attributes {dimension_semantics = [#tpu.dimension_semantics<parallel>], iteration_bounds = array<i64: 2>, scalar_prefetch = 0 : i64, scratch_operands = 1 : i64, tpu.core_type = #tpu.core_type<tc>, window_params = [{transform_indices = @transform_0, window_bounds = array<i64: 8, 256>}, {transform_indices = @transform_1, window_bounds = array<i64: 9>}, {transform_indices = @transform_2, window_bounds = array<i64: 8, 256>}]} {
    %cst = arith.constant 0.000000e+00 : f32
    %0 = vector.broadcast %cst : f32 to vector<8x4xf32>
    %c0 = arith.constant 0 : index
    %c124 = arith.constant 124 : index
    %1 = vector.load %arg4[%c0, %c124] : memref<8x388xf32, #tpu.memory_space<vmem>>, vector<8x4xf32>
    tpu.vector_store %arg4[%c0, %c124], %0 {strides = array<i32>} : memref<8x388xf32, #tpu.memory_space<vmem>>, vector<8x4xf32>,
    %c0_0 = arith.constant 0 : index
    %c384 = arith.constant 384 : index
    %2 = vector.load %arg4[%c0_0, %c384] : memref<8x388xf32, #tpu.memory_space<vmem>>, vector<8x4xf32>
    tpu.vector_store %arg4[%c0_0, %c384], %0 {strides = array<i32>} : memref<8x388xf32, #tpu.memory_space<vmem>>, vector<8x4xf32>,
    %c0_1 = arith.constant 0 : index
    %c0_2 = arith.constant 0 : index
    %3 = vector.load %arg1[%c0_1, %c0_2] : memref<8x256xf32, #tpu.memory_space<vmem>>, vector<8x256xf32>
    %c0_3 = arith.constant 0 : index
    %c128 = arith.constant 128 : index
    %4 = vector.load %arg4[%c0_3, %c128] : memref<8x388xf32, #tpu.memory_space<vmem>>, vector<8x256xf32>
    tpu.vector_store %arg4[%c0_3, %c128], %3 {strides = array<i32>} : memref<8x388xf32, #tpu.memory_space<vmem>>, vector<8x256xf32>,
    %c0_4 = arith.constant 0 : index
    %5 = memref.load %arg2[%c0_4] : memref<9xf32, #tpu.memory_space<smem>>
    %c1 = arith.constant 1 : index
    %6 = memref.load %arg2[%c1] : memref<9xf32, #tpu.memory_space<smem>>
    %c2 = arith.constant 2 : index
    %7 = memref.load %arg2[%c2] : memref<9xf32, #tpu.memory_space<smem>>
    %c3 = arith.constant 3 : index
    %8 = memref.load %arg2[%c3] : memref<9xf32, #tpu.memory_space<smem>>
    %c4 = arith.constant 4 : index
    %9 = memref.load %arg2[%c4] : memref<9xf32, #tpu.memory_space<smem>>
    %c5 = arith.constant 5 : index
    %10 = memref.load %arg2[%c5] : memref<9xf32, #tpu.memory_space<smem>>
    %c6 = arith.constant 6 : index
    %11 = memref.load %arg2[%c6] : memref<9xf32, #tpu.memory_space<smem>>
    %c7 = arith.constant 7 : index
    %12 = memref.load %arg2[%c7] : memref<9xf32, #tpu.memory_space<smem>>
    %c8 = arith.constant 8 : index
    %13 = memref.load %arg2[%c8] : memref<9xf32, #tpu.memory_space<smem>>
    %c0_5 = arith.constant 0 : index
    %c124_6 = arith.constant 124 : index
    %14 = vector.load %arg4[%c0_5, %c124_6] : memref<8x388xf32, #tpu.memory_space<vmem>>, vector<8x256xf32>
    %15 = vector.broadcast %5 : f32 to vector<8x256xf32>
    %16 = arith.mulf %14, %15 : vector<8x256xf32>
    %c0_7 = arith.constant 0 : index
    %c125 = arith.constant 125 : index
    %17 = vector.load %arg4[%c0_7, %c125] : memref<8x388xf32, #tpu.memory_space<vmem>>, vector<8x256xf32>
    %18 = vector.broadcast %6 : f32 to vector<8x256xf32>
    %19 = arith.mulf %17, %18 : vector<8x256xf32>
    %20 = arith.addf %16, %19 : vector<8x256xf32>
    %c0_8 = arith.constant 0 : index
    %c126 = arith.constant 126 : index
    %21 = vector.load %arg4[%c0_8, %c126] : memref<8x388xf32, #tpu.memory_space<vmem>>, vector<8x256xf32>
    %22 = vector.broadcast %7 : f32 to vector<8x256xf32>
    %23 = arith.mulf %21, %22 : vector<8x256xf32>
    %24 = arith.addf %20, %23 : vector<8x256xf32>
    %c0_9 = arith.constant 0 : index
    %c127 = arith.constant 127 : index
    %25 = vector.load %arg4[%c0_9, %c127] : memref<8x388xf32, #tpu.memory_space<vmem>>, vector<8x256xf32>
    %26 = vector.broadcast %8 : f32 to vector<8x256xf32>
    %27 = arith.mulf %25, %26 : vector<8x256xf32>
    %28 = arith.addf %24, %27 : vector<8x256xf32>
    %c0_10 = arith.constant 0 : index
    %c128_11 = arith.constant 128 : index
    %29 = vector.load %arg4[%c0_10, %c128_11] : memref<8x388xf32, #tpu.memory_space<vmem>>, vector<8x256xf32>
    %30 = vector.broadcast %9 : f32 to vector<8x256xf32>
    %31 = arith.mulf %29, %30 : vector<8x256xf32>
    %32 = arith.addf %28, %31 : vector<8x256xf32>
    %c0_12 = arith.constant 0 : index
    %c129 = arith.constant 129 : index
    %33 = vector.load %arg4[%c0_12, %c129] : memref<8x388xf32, #tpu.memory_space<vmem>>, vector<8x256xf32>
    %34 = vector.broadcast %10 : f32 to vector<8x256xf32>
    %35 = arith.mulf %33, %34 : vector<8x256xf32>
    %36 = arith.addf %32, %35 : vector<8x256xf32>
    %c0_13 = arith.constant 0 : index
    %c130 = arith.constant 130 : index
    %37 = vector.load %arg4[%c0_13, %c130] : memref<8x388xf32, #tpu.memory_space<vmem>>, vector<8x256xf32>
    %38 = vector.broadcast %11 : f32 to vector<8x256xf32>
    %39 = arith.mulf %37, %38 : vector<8x256xf32>
    %40 = arith.addf %36, %39 : vector<8x256xf32>
    %c0_14 = arith.constant 0 : index
    %c131 = arith.constant 131 : index
    %41 = vector.load %arg4[%c0_14, %c131] : memref<8x388xf32, #tpu.memory_space<vmem>>, vector<8x256xf32>
    %42 = vector.broadcast %12 : f32 to vector<8x256xf32>
    %43 = arith.mulf %41, %42 : vector<8x256xf32>
    %44 = arith.addf %40, %43 : vector<8x256xf32>
    %c0_15 = arith.constant 0 : index
    %c132 = arith.constant 132 : index
    %45 = vector.load %arg4[%c0_15, %c132] : memref<8x388xf32, #tpu.memory_space<vmem>>, vector<8x256xf32>
    %46 = vector.broadcast %13 : f32 to vector<8x256xf32>
    %47 = arith.mulf %45, %46 : vector<8x256xf32>
    %48 = arith.addf %44, %47 : vector<8x256xf32>
    %c0_16 = arith.constant 0 : index
    %c0_17 = arith.constant 0 : index
    %49 = vector.load %arg3[%c0_16, %c0_17] : memref<8x256xf32, #tpu.memory_space<vmem>>, vector<8x256xf32>
    tpu.vector_store %arg3[%c0_16, %c0_17], %48 {strides = array<i32>} : memref<8x256xf32, #tpu.memory_space<vmem>>, vector<8x256xf32>,
    return
  }
  func.func @transform_0(%arg0: i32) -> (i32, i32) {
    %c0_i32 = arith.constant 0 : i32
    %c0_i32_0 = arith.constant 0 : i32
    return %arg0, %c0_i32 : i32, i32
  }
  func.func @transform_1(%arg0: i32) -> i32 {
    %c0_i32 = arith.constant 0 : i32
    %c0_i32_0 = arith.constant 0 : i32
    return %c0_i32 : i32
  }
  func.func @transform_2(%arg0: i32) -> (i32, i32) {
    %c0_i32 = arith.constant 0 : i32
    %c0_i32_0 = arith.constant 0 : i32
    return %arg0, %c0_i32 : i32, i32
  }
}

</mosaic_0001>

<bundles_post_ra>
// kernel: tpu_custom_call.1
= control target key start
LH: loop header
LB: loop body
LE: loop exit
PB: predicated region body
PF: predicated region fallthrough
CT: control target
= control target key end

     0   :  { %7 = vsyncpa [#allocation4], 0  ;;  %s959_s0 = inlined_call_operand.hbm [shape: f32[16,256], index: 0, kind: input, shape index: {}]   ;;  %s960_s1 = inlined_call_operand.vmem [shape: f32[9], index: 1, kind: input, shape index: {}]   ;;  %s961_s2 = inlined_call_operand.hbm [shape: f32[16,256], index: 2, kind: output, shape index: {}]  }
   0x1   :  { %9 = vsyncpa [#allocation4 + $0x1], 0 }
   0x2   :  { %10 = vsyncpa [#allocation6], 0 }
   0x3   :  { %11 = vsyncpa [#allocation5], 0 }
   0x4   :  { %13 = vsyncpa [#allocation5 + $0x1], 0  ;;  %s720_s9 = smov 0   ;;  %s722_s10 = smov 0  }
   0x5   :  { %s724_s11 = smov 0   ;;  %s726_s12 = smov 0  }
   0x6 LB: > { %s741_s13 = sadd.s32 4294967295, %s690_s12   ;;  %s482_s14 = sadd.s32 4294967294, %s690_s12   ;;  %s690_s12 = sphi %s726_s12, %s982_s12   ;;  %s686_s11 = sphi %s724_s11, %s981_s11   ;;  %s682_s10 = sphi %s722_s10, %s980_s10   ;;  %s678_s9 = sphi %s720_s9, %s979_s9  }
   0x7   : > { %p39_p0 = scmp.ne.s32.totalorder %s682_s10, %s678_s9  ;;  %p962_p1 = scmp.eq.s32.totalorder %s741_s13, 0 }
   0x8   : > { %p90_p3 = scmp.eq.s32.totalorder %s482_s14, 1  ;;  %p483_p5 = scmp.ge.s32.totalorder %s690_s12, 1 }
   0x9   : > { %p750_p4 = por %p962_p1, %p39_p0  ;;  %p97_p7 = scmp.lt.s32.totalorder %s690_s12, 3 }
   0xa   : > { %p755_p6 = por %p90_p3, %p39_p0  ;;  %s110_s19 = sshll.u32 %s960_s1, 4  ;;  %s111_s19 = int_to_ptr.vmem [resolvable:$true] %s110_s19 }
   0xb   : > { %s965_s15 = scalar_select %p750_p4, 1, 0 }
   0xc   : > { %s966_s16 = scalar_select %p755_p6, 1, 0 }
   0xd   : > { %p763_p8 = pnand %p483_p5, %p97_p7  ;;  %s771_s21 = sadd.s32 1, %s690_s12  }
   0xe   : > { %s23_s23 = ssub.s32 %s690_s12, %s771_s21  ;;  %s26_s25 = sadd.s32 1, %s686_s11 }
   0xf   : > { %p516_p10 = pneg %p763_p8  ;;  %p781_p12 = scmp.eq.s32.totalorder %s23_s23, 0 }
  0x10   : > { %p33_p13 = scmp.ne.s32.totalorder %s686_s11, %s682_s10  ;;  %s575_s26 = scalar_lea.vmem %s111_s19, 16 }
  0x11   : > { %p775_p11 = pnand %p516_p10, %p962_p1  ;;  %p576_p0 = scmp.ne.s32.totalorder %s111_s19, %s575_s26 }
  0x12   : > { %p583_p9 = scmp.lt.s32.totalorder %s111_s19, %s111_s19  ;;  %p584_p2 = scmp.lt.s32.totalorder %s575_s26, %s575_s26 }
  0x13   : > { %p577_p3 = pneg %p775_p11 }
  0x14   : > { %p585_p10 = por %p584_p2, %p583_p9 }
  0x15   : > { %p578_p5 = pnand %p577_p3, %p576_p0 }
  0x17   : > { %p579_p7 = pneg %p578_p5 }
  0x19   : > { %p586_p1 = pnand %p585_p10, %p579_p7 }
  0x1b   : > { %589 = shalt.err (!%p586_p1)
}
  0x1c   : > { %s692_s27 = smov [#allocation7]   ;;  %p34_p2 = scmp.eq.s32.totalorder %s690_s12, 0 }
  0x1d   : > { %519 = dma.vmem_to_smem (!%p775_p11), %s111_s19, 16, %s692_s27, [#allocation6]  }
  0x1e   : > { %s795_s28 = scalar_select %p781_p12, %s686_s11, %s26_s25  }
  0x1f   : > { %p970_p1 = scmp.eq.s32.totalorder %s741_s13, 1  ;;  %p529_p0 = scmp.lt.s32.totalorder %s690_s12, 2 }
  0x20   : > { %s121_s30 = sand.u32 1, %s686_s11   ;;  %p35_p3 = por %p34_p2, %p33_p13 }
  0x21   : > { %p803_p9 = por %p970_p1, %p33_p13  ;;  %s486_s3 = sshll.u32 %s121_s30, 4 }
  0x22   : > { %s506_s4 = sshll.u32 %s690_s12, 8  ;;  %s125_s8 = scalar_lea.vmem [#allocation3], %s486_s3 }
  0x23   : > { %s971_s29 = scalar_select %p803_p9, 1, 0 }
  0x24   : > { %s816_s7 = scalar_lea.hbm %s959_s0, %s506_s4  ;;  %s133_s14 = sshll.u32 %s125_s8, 4  ;;  %s822_s14 = int_to_ptr.vmem [resolvable:$true] %s133_s14 }
  0x25   : > { %p818_p11 = pnand %p529_p0, %p35_p3  ;;  %s122_s18 = scalar_lea.sflag [#allocation4], %s121_s30 }
  0x26   : > { %s590_s19 = scalar_lea.hbm %s816_s7, 256  ;;  %s595_s24 = scalar_lea.hbm %s959_s0, 512 }
  0x27   : > { %p591_p12 = scmp.ne.s32.totalorder %s816_s7, %s590_s19  ;;  %p592_p13 = pneg %p818_p11 }
  0x28   : > { %p596_p10 = scmp.lt.u32.totalorder %s816_s7, %s959_s0  ;;  %p597_p2 = scmp.lt.u32.totalorder %s595_s24, %s590_s19 }
  0x29   : > { %p593_p5 = pnand %p592_p13, %p591_p12  ;;  %p599_p0 = scmp.lt.u32.totalorder %s590_s19, %s816_s7 }
  0x2a   : > { %p598_p1 = por %p597_p2, %p596_p10 }
  0x2b   : > { %p594_p7 = pneg %p593_p5 }
  0x2c   : > { %p600_p3 = por %p599_p0, %p598_p1 }
  0x2e   : > { %p601_p6 = pnand %p600_p3, %p594_p7 }
  0x30   : > { %604 = shalt.err (!%p601_p6)
}
  0x31   : > { %s605_s27 = scalar_lea.vmem %s822_s14, 256  ;;  %s693_s30 = smov [#allocation3]  }
  0x32   : > { %p606_p12 = scmp.ne.s32.totalorder %s822_s14, %s605_s27  ;;  %s610_s3 = sshll.u32 %s693_s30, 4  ;;  %s611_s3 = int_to_ptr.vmem [resolvable:$false] %s610_s3 }
  0x33   : > { %s612_s4 = scalar_lea.vmem %s611_s3, 512  ;;  %p613_p4 = scmp.lt.s32.totalorder %s822_s14, %s611_s3 }
  0x34   : > { %p608_p5 = pnand %p606_p12, %p592_p13  ;;  %p614_p10 = scmp.lt.s32.totalorder %s612_s4, %s605_s27 }
  0x36   : > { %p609_p9 = pneg %p608_p5  ;;  %p615_p2 = por %p614_p10, %p613_p4 }
  0x38   : > { %p616_p1 = pnand %p615_p2, %p609_p9 }
  0x3a   : > { %619 = shalt.err (!%p616_p1)
}
  0x3b   : > { %523 = dma.hbm_to_vmem [thread:$0]  (!%p818_p11), %s816_s7, 256, %s822_s14, %s122_s18  }
  0x3c   : > { %142 = sbr.rel (%p763_p8) target bundleno = 377 (0x179), region = 28  ;;  %s852_s5 = sand.u32 (!%p763_p8), 1, %s682_s10  }
  0x3d   : > { %s490_s6 = sshll.u32 (!%p763_p8), %s852_s5, 4  ;;  %s145_s8 = scalar_lea.sflag (!%p763_p8), [#allocation4], %s852_s5 }
  0x3e   : > { %s148_s19 = scalar_lea.vmem (!%p763_p8), [#allocation3], %s490_s6  ;;  %p973_p4 = scmp.ne.s32.totalorder (!%p763_p8), %s965_s15, 0 }
  0x43   : > { %665 = dma.done.wait (%p973_p4), %s145_s8, 256  }
  0x44   : > { %667 = vsyncadd (%p973_p4), %s145_s8, 4294967040  ;;  %p974_p6 = scmp.eq.s32.totalorder %s741_s13, 0 }
  0x46   : > { %669 = dma.done.wait (%p974_p6), [#allocation6], 16   ;;  %p975_p8 = pmov %p974_p6 }
  0x48   : > { %671 = vsyncadd (%p975_p8), [#allocation6], 4294967280 }
  0x49   : > { %157 = sfence }
  0x4a   : > { %v866_v0 = vld [vmem:[%s148_s19 + $0x8] sm:$0xff]  ;;  %s493_s20 = sld [smem:[#allocation7 + $0x1]]  ;;  %vm174_vm0 = vcmask 1048544   ;;  %v694_v1 = vmov 0.0   ;;  %vm176_vm1 = vcmask 31744   ;;  %s494_s7 = sld [smem:[#allocation7 + $0x2]] }
  0x4b   : > { %175 = vst.msk [vmem:[#allocation2] sm:$0xff] %vm174_vm0, %v694_v1  ;;  %v868_v2 = vld [vmem:[%s148_s19] sm:$0xff]  ;;  %s495_s15 = sld [smem:[#allocation7 + $0x3]]  ;;  %s695_s14 = smov 127   ;;  %vm211_vm2 = vcmask 1039360   ;;  %vm233_vm3 = vcmask 1031168  }
  0x4c   : > { %177 = vst.msk [vmem:[#allocation2 + $0x18] sm:$0xff] %vm176_vm1, %v694_v1  ;;  %s496_s17 = sld [smem:[#allocation7 + $0x4]]  ;;  %s696_s18 = smov 126   ;;  %vm255_vm4 = vcmask 1022976   ;;  %vm273_vm5 = vcmask 1014784   ;;  %vm295_vm6 = vcmask 1006592  }
  0x4d   : > { %s497_s22 = sld [smem:[#allocation7 + $0x5]]  ;;  %s697_s23 = smov 125   ;;  %vm317_vm7 = vcmask 998400   ;;  %vm339_vm8 = vcmask 990208   ;;  %vm361_vm9 = vcmask 982016  }
  0x4e   : > { %s498_s24 = sld [smem:[#allocation7 + $0x6]]  ;;  %s698_s25 = smov 124  }
  0x4f   : > { %s499_s26 = sld [smem:[#allocation7 + $0x7]]  ;;  %s699_s27 = smov 123  }
  0x50   : > { %v198_v3 = vstv %s493_s20  ;;  %v220_v5 = vstv %s494_s7  ;;  %s500_s30 = sld [smem:[#allocation7 + $0x8]]  ;;  %s700_s3 = smov 122  }
  0x51   : > { %v201_v4 = vmul.f32 %v198_v3, %v866_v0  ;;  %v200_v9 = vmul.f32 %v198_v3, %v868_v2  ;;  %v223_v10 = vmul.f32 %v220_v5, %v866_v0  ;;  %v242_v11 = vstv %s495_s15  ;;  %s701_s4 = smov 121   ;;  %s702_s8 = smov 120  }
  0x52   : > { %v872_v6 = vld [vmem:[#allocation2] sm:$0xff]  ;;  %v222_v12 = vmul.f32 %v220_v5, %v868_v2  ;;  %v244_v13 = vmul.f32 %v242_v11, %v868_v2  ;;  %v264_v14 = vstv %s496_s17  ;;  %v245_v18 = vmul.f32 %v242_v11, %v866_v0  ;;  %s182_s19 = sld [smem:[#allocation7]]  ;;  %s703_s20 = smov 4  }
  0x53   : > { %209 = vrot.lane.b32.xlu1 %v201_v4, %s695_s14  ;;  %v199_v7 = vmul.f32 %v198_v3, %v872_v6  ;;  %v221_v8 = vmul.f32 %v220_v5, %v872_v6  ;;  %v243_v15 = vmul.f32 %v242_v11, %v872_v6  ;;  %v265_v16 = vmul.f32 %v264_v14, %v868_v2  ;;  %v281_v20 = vld [vmem:[#allocation2 + $0x18] sm:$0xff]  ;;  %s507_s7 = sshll.u32 %s741_s13, 8  ;;  %s173_s15 = scalar_lea.vmem [#allocation8], %s490_s6 }
  0x54   : > { %v282_v17 = vstv %s497_s22  ;;  %v266_v21 = vmul.f32 %v264_v14, %v866_v0  ;;  %v304_v23 = vstv %s498_s24  ;;  %s914_s22 = scalar_lea.hbm %s961_s2, %s507_s7  ;;  %p976_p11 = scmp.ne.s32.totalorder %s971_s29, 0 }
  0x55   : > { %205 = vrot.lane.b32.xlu0 %v199_v7, %s695_s14  ;;  %v283_v19 = vmul.f32 %v282_v17, %v868_v2  ;;  %v285_v22 = vmul.f32 %v282_v17, %v281_v20  ;;  %v284_v24 = vmul.f32 %v282_v17, %v866_v0  ;;  %v306_v25 = vmul.f32 %v304_v23, %v866_v0  ;;  %s704_s6 = smov [#allocation8]  }
  0x56   : > { %v326_v26 = vstv %s499_s26  ;;  %v305_v27 = vmul.f32 %v304_v23, %v868_v2  ;;  %v307_v29 = vmul.f32 %v304_v23, %v281_v20  ;;  %v348_v31 = vstv %s500_s30  ;;  %s624_s24 = sshll.u32 %s704_s6, 4  ;;  %s625_s24 = int_to_ptr.vmem [resolvable:$false] %s624_s24 }
  0x57   : > { %227 = vrot.lane.b32.xlu1 %v221_v8, %s696_s18  ;;  %v327_v28 = vmul.f32 %v326_v26, %v868_v2  ;;  %v329_v30 = vmul.f32 %v326_v26, %v281_v20  ;;  %v328_v32 = vmul.f32 %v326_v26, %v866_v0  ;;  %v350_v33 = vmul.f32 %v348_v31, %v866_v0 }
  0x58   : > { %v349_v34 = vmul.f32 %v348_v31, %v868_v2  ;;  %v351_v35 = vmul.f32 %v348_v31, %v281_v20  ;;  %v194_v44 = vstv %s182_s19 }
  0x59   : > { %207 = vrot.lane.b32.xlu0 %v200_v9, %s695_s14  ;;  %v195_v47 = vmul.f32 %v194_v44, %v872_v6  ;;  %v196_v56 = vmul.f32 %v194_v44, %v868_v2  ;;  %v197_v60 = vmul.f32 %v194_v44, %v866_v0  ;;  %s400_s14 = sshll.u32 %s173_s15, 4  ;;  %s916_s14 = int_to_ptr.vmem [resolvable:$true] %s400_s14 }
  0x5a   : > { %s620_s13 = scalar_lea.vmem %s916_s14, 256  ;;  %p627_p0 = scmp.lt.s32.totalorder %s916_s14, %s625_s24 }
  0x5b   : > { %231 = vrot.lane.b32.xlu1 %v223_v10, %s696_s18  ;;  %p621_p9 = scmp.ne.s32.totalorder %s916_s14, %s620_s13 }
  0x5d   : > { %229 = vrot.lane.b32.xlu0 %v222_v12, %s696_s18  ;;  %p622_p13 = pnand %p621_p9, %p976_p11 }
  0x5f   : > { %251 = vrot.lane.b32.xlu1 %v244_v13, %s697_s23  ;;  %p623_p7 = pneg %p622_p13 }
  0x61   : > { %249 = vrot.lane.b32.xlu0 %v243_v15, %s697_s23 }
  0x63   : > { %269 = vrot.lane.b32.xlu1 %v265_v16, %s698_s25 }
  0x65   : > { %253 = vrot.lane.b32.xlu0 %v245_v18, %s697_s23  ;;  %s386_s23 = scalar_lea.sflag [#allocation5], %s852_s5 }
  0x67   : > { %289 = vrot.lane.b32.xlu1 %v283_v19, %s699_s27 }
  0x69   : > { %271 = vrot.lane.b32.xlu0 %v266_v21, %s698_s25  ;;  %s626_s25 = scalar_lea.vmem %s625_s24, 512 }
  0x6a   : > { %p628_p3 = scmp.lt.s32.totalorder %s626_s25, %s620_s13 }
  0x6b   : > { %293 = vrot.lane.b32.xlu1 %v285_v22, %s699_s27 }
  0x6c   : > { %p629_p12 = por %p628_p3, %p627_p0 }
  0x6d   : > { %291 = vrot.lane.b32.xlu0 %v284_v24, %s699_s27 }
  0x6e   : > { %p630_p5 = pnand %p629_p12, %p623_p7 }
  0x6f   : > { %313 = vrot.lane.b32.xlu1 %v306_v25, %s700_s3 }
  0x71   : > { %311 = vrot.lane.b32.xlu0 %v305_v27, %s700_s3 }
  0x73   : > { %333 = vrot.lane.b32.xlu1 %v327_v28, %s701_s4 }
  0x75   : > { %315 = vrot.lane.b32.xlu0 %v307_v29, %s700_s3 }
  0x77   : > { %337 = vrot.lane.b32.xlu1 %v329_v30, %s701_s4 }
  0x79   : > { %335 = vrot.lane.b32.xlu0 %v328_v32, %s701_s4 }
  0x7b   : > { %357 = vrot.lane.b32.xlu1 %v350_v33, %s702_s8 }
  0x7d   : > { %355 = vrot.lane.b32.xlu0 %v349_v34, %s702_s8 }
  0x81   : > { %359 = vrot.lane.b32.xlu0 %v351_v35, %s702_s8 }
  0xc5   : > { %v210_v36 = vpop.permute.xlu1 %209 }
  0xc6   : > { %v219_v5 = vadd.f32 %v210_v36, %v197_v60 }
  0xc7   : > { %v206_v37 = vpop.permute.xlu0 %205 }
  0xc9   : > { %v228_v38 = vpop.permute.xlu1 %227 }
  0xcb   : > { %v208_v39 = vpop.permute.xlu0 %207 }
  0xcc   : > { %v212_v48 = vsel %vm211_vm2, %v206_v37, %v208_v39  ;;  %v213_v58 = vsel %vm211_vm2, %v208_v39, %v210_v36 }
  0xcd   : > { %v232_v40 = vpop.permute.xlu1 %231  ;;  %v217_v52 = vadd.f32 %v212_v48, %v195_v47  ;;  %v218_v63 = vadd.f32 %v213_v58, %v196_v56 }
  0xce   : > { %v241_v11 = vadd.f32 %v232_v40, %v219_v5 }
  0xcf   : > { %v230_v41 = vpop.permute.xlu0 %229 }
  0xd0   : > { %v234_v50 = vsel %vm233_vm3, %v228_v38, %v230_v41  ;;  %v235_v62 = vsel %vm233_vm3, %v230_v41, %v232_v40 }
  0xd1   : > { %v252_v42 = vpop.permute.xlu1 %251  ;;  %v239_v55 = vadd.f32 %v234_v50, %v217_v52  ;;  %v240_v6 = vadd.f32 %v235_v62, %v218_v63 }
  0xd3   : > { %v250_v43 = vpop.permute.xlu0 %249 }
  0xd4   : > { %v256_v53 = vsel %vm255_vm4, %v250_v43, %v252_v42 }
  0xd5   : > { %v270_v45 = vpop.permute.xlu1 %269  ;;  %v261_v59 = vadd.f32 %v256_v53, %v239_v55 }
  0xd7   : > { %v254_v46 = vpop.permute.xlu0 %253  ;;  %v278_v3 = vadd.f32 %v270_v45, %v261_v59 }
  0xd8   : > { %v257_v4 = vsel %vm255_vm4, %v252_v42, %v254_v46  ;;  %v263_v16 = vadd.f32 %v254_v46, %v241_v11 }
  0xd9   : > { %v290_v49 = vpop.permute.xlu1 %289  ;;  %v262_v2 = vadd.f32 %v257_v4, %v240_v6 }
  0xda   : > { %v301_v10 = vadd.f32 %v290_v49, %v278_v3 }
  0xdb   : > { %v272_v51 = vpop.permute.xlu0 %271 }
  0xdc   : > { %v274_v8 = vsel %vm273_vm5, %v270_v45, %v272_v51  ;;  %v280_v21 = vadd.f32 %v272_v51, %v263_v16 }
  0xdd   : > { %v294_v54 = vpop.permute.xlu1 %293  ;;  %v279_v12 = vadd.f32 %v274_v8, %v262_v2 }
  0xdf   : > { %v292_v57 = vpop.permute.xlu0 %291 }
  0xe0   : > { %v296_v0 = vsel %vm295_vm6, %v290_v49, %v292_v57  ;;  %v297_v19 = vsel %vm295_vm6, %v292_v57, %v294_v54 }
  0xe1   : > { %v314_v61 = vpop.permute.xlu1 %313  ;;  %v302_v17 = vadd.f32 %v296_v0, %v279_v12  ;;  %v303_v26 = vadd.f32 %v297_v19, %v280_v21 }
  0xe3   : > { %v312_v1 = vpop.permute.xlu0 %311 }
  0xe4   : > { %v318_v14 = vsel %vm317_vm7, %v312_v1, %v314_v61  ;;  %v323_v15 = vadd.f32 %v312_v1, %v301_v10 }
  0xe5   : > { %v334_v7 = vpop.permute.xlu1 %333  ;;  %v324_v22 = vadd.f32 %v318_v14, %v302_v17 }
  0xe6   : > { %v345_v24 = vadd.f32 %v334_v7, %v323_v15 }
  0xe7   : > { %v316_v9 = vpop.permute.xlu0 %315 }
  0xe8   : > { %v319_v25 = vsel %vm317_vm7, %v314_v61, %v316_v9 }
  0xe9   : > { %v338_v13 = vpop.permute.xlu1 %337  ;;  %v325_v32 = vadd.f32 %v319_v25, %v303_v26 }
  0xeb   : > { %v336_v18 = vpop.permute.xlu0 %335 }
  0xec   : > { %v340_v20 = vsel %vm339_vm8, %v334_v7, %v336_v18  ;;  %v341_v29 = vsel %vm339_vm8, %v336_v18, %v338_v13 }
  0xed   : > { %v358_v23 = vpop.permute.xlu1 %357  ;;  %v346_v27 = vadd.f32 %v340_v20, %v324_v22  ;;  %v347_v34 = vadd.f32 %v341_v29, %v325_v32 }
  0xef   : > { %v356_v28 = vpop.permute.xlu0 %355 }
  0xf0   : > { %v362_v30 = vsel %vm361_vm9, %v356_v28, %v358_v23  ;;  %v367_v31 = vadd.f32 %v356_v28, %v345_v24 }
  0xf1   : > { %v368_v33 = vadd.f32 %v362_v30, %v346_v27 }
  0xf2   : > { %373 = vrot.lane.b32.xlu1 %v367_v31, %s703_s20 }
  0xf3   : > { %375 = vrot.lane.b32.xlu0 %v368_v33, %s703_s20  ;;  %v360_v35 = vpop.permute.xlu0 %359 }
  0xf4   : > { %v363_v36 = vsel %vm361_vm9, %v358_v23, %v360_v35 }
  0xf5   : > { %v369_v37 = vadd.f32 %v363_v36, %v347_v34 }
  0xf7   : > { %377 = vrot.lane.b32.xlu1 %v369_v37, %s703_s20 }
 0x164   : > { %v374_v38 = vpop.permute.xlu1 %373 }
 0x165   : > { %v376_v39 = vpop.permute.xlu0 %375 }
 0x166   : > { %v379_v40 = vsel %vm176_vm1, %v374_v38, %v376_v39 }
 0x167   : > { %383 = vst [vmem:[%s173_s15] sm:$0xff] %v379_v40 }
 0x169   : > { %v378_v41 = vpop.permute.xlu1 %377 }
 0x16a   : > { %v380_v42 = vsel %vm176_vm1, %v376_v39, %v378_v41 }
 0x16b   : > { %384 = vst [vmem:[%s173_s15 + $0x8] sm:$0xff] %v380_v42 }
 0x16c   : > { %633 = shalt.err (!%p630_p5)
}
 0x16d   : > { %s634_s5 = scalar_lea.hbm %s914_s22, 256  ;;  %s638_s30 = scalar_lea.hbm %s961_s2, 512 }
 0x16e   : > { %p635_p10 = scmp.ne.s32.totalorder %s914_s22, %s634_s5  ;;  %p639_p4 = scmp.lt.u32.totalorder %s914_s22, %s961_s2 }
 0x16f   : > { %p640_p6 = scmp.lt.u32.totalorder %s638_s30, %s634_s5  ;;  %p642_p9 = scmp.lt.u32.totalorder %s634_s5, %s914_s22 }
 0x170   : > { %p636_p2 = pnand %p635_p10, %p976_p11 }
 0x171   : > { %p641_p8 = por %p640_p6, %p639_p4 }
 0x172   : > { %p637_p1 = pneg %p636_p2 }
 0x173   : > { %p643_p13 = por %p642_p9, %p641_p8 }
 0x175   : > { %p644_p7 = pnand %p643_p13, %p637_p1 }
 0x177   : > { %647 = shalt.err (!%p644_p7)
}
 0x178   : > { %514 = dma.vmem_to_hbm [thread:$0]  (%p976_p11), %s916_s14, 256, %s914_s22, %s386_s23  }
 0x179 PF: > { %s412_s8 = sand.u32 1, %s678_s9   ;;  %p977_p0 = scmp.ne.s32.totalorder %s966_s16, 0 }
 0x17a   : > { %p978_p3 = scmp.ge.s32.totalorder %s690_s12, 2  ;;  %s413_s19 = scalar_lea.sflag [#allocation5], %s412_s8 }
 0x17c   : > { %p525_p12 = pnand %p978_p3, %p977_p0 }
 0x17e   : > { %673 = dma.done.wait (!%p525_p12), %s413_s19, 256  }
 0x17f   : > { %675 = vsyncadd (!%p525_p12), %s413_s19, 4294967040  ;;  %p16_p5 = scmp.ge.s32.totalorder %s771_s21, 4   ;;  %s979_s9 = smov %s682_s10 }
 0x180   : > { %s980_s10 = smov %s686_s11  ;;  %s981_s11 = smov %s795_s28 }
 0x181   : > { %s982_s12 = smov %s771_s21  ;;  %18 = sbr.rel (!%p16_p5) target bundleno = 6 (0x6), region = 78 }
 0x188   :  { %418 = vsyncpa [#allocation4], 1 }
 0x189   :  { %420 = vsyncpa [#allocation4 + $0x1], 1 }
 0x18a   :  { %421 = vsyncpa [#allocation5], 1 }
 0x18b   :  { %423 = vsyncpa [#allocation5 + $0x1], 1 }
 0x18c   :  { %424 = vsyncpa [#allocation6], 1 }
 0x18d   :  { %426 = vsyncpa [#allocation6 + $0x1], 1 }

</bundles_post_ra>
